<compile_context>
chip_gen: v7x
topology: tpu7x:2x2x1
jax: 0.10.0
libtpu: 0.0.40
codegen_flags: <defaults>
</compile_context>

<pallas_src>
import functools

import jax
import jax.numpy as jnp
from jax.experimental import pallas as pl
from jax.experimental.pallas import tpu as pltpu


def _round_up(x, m):
    return (x + m - 1) // m * m


def _pick_token_tile(T, I, H, act_itemsize, w_itemsize, out_itemsize,
                     budget_bytes=48 * 1024 * 1024):
    """Largest MXU-aligned token tile whose working set fits the VMEM budget."""
    weight_bytes = I * H * w_itemsize
    t_pad8 = _round_up(T, 8)
    for tm in (1024, 512, 256, 128):
        tm_eff = min(tm, t_pad8)
        # double-buffered input tile, residual tile and output tile + resident weight/params
        per_step = tm_eff * I * act_itemsize + tm_eff * H * act_itemsize + tm_eff * H * out_itemsize
        if weight_bytes + 2 * per_step + 3 * H * 4 <= budget_bytes:
            return tm_eff
    return min(128, t_pad8)


def bert_output_kernel(h_ref, w_ref, b_ref, res_ref, g_ref, beta_ref, o_ref, *, eps):
    # dense: native dtype straight into the MXU, f32 accumulation.
    x = jnp.dot(h_ref[...], w_ref[...], preferred_element_type=jnp.float32)

    # Read the (1, H) parameters once per grid step, in f32.
    bias = b_ref[...].astype(jnp.float32)
    gamma = g_ref[...].astype(jnp.float32)
    beta = beta_ref[...].astype(jnp.float32)

    # dropout: inference mode -> identity
    # TODO(synk): training-mode dropout (prob > 0) not implemented; eval semantics only.

    # residual add with the dense bias folded in.
    x = x + (res_ref[...].astype(jnp.float32) + bias)

    # LayerNorm over the hidden axis (biased variance, like torch.nn.LayerNorm).
    mean = jnp.mean(x, axis=-1, keepdims=True)
    centered = x - mean
    var = jnp.mean(centered * centered, axis=-1, keepdims=True)
    inv = jax.lax.rsqrt(var + eps)          # EUP, off the VALU critical path
    y = centered * (inv * gamma) + beta

    o_ref[...] = y.astype(o_ref.dtype)


def bert_output(hidden_states, input_tensor, weight, bias, gamma, beta,
                *, eps=1e-12, tm=None):
    """hidden_states: [T, I], input_tensor: [T, H], weight: [I, H].

    bias/gamma/beta: [H] or [1, H]. For large configs, pass `weight` (and the
    activations) in bf16 to halve VMEM and feed the MXU natively.
    """
    T, I = hidden_states.shape
    H = weight.shape[1]
    out_dtype = hidden_states.dtype

    bias = bias.reshape(1, H)
    gamma = gamma.reshape(1, H)
    beta = beta.reshape(1, H)

    act_itemsize = jnp.dtype(hidden_states.dtype).itemsize
    w_itemsize = jnp.dtype(weight.dtype).itemsize
    out_itemsize = jnp.dtype(out_dtype).itemsize

    if tm is None:
        tm_eff = _pick_token_tile(T, I, H, act_itemsize, w_itemsize, out_itemsize)
    else:
        tm_eff = min(tm, _round_up(T, 8))

    T_pad = _round_up(T, tm_eff)
    if T_pad != T:
        hidden_states = jnp.pad(hidden_states, ((0, T_pad - T), (0, 0)))
        input_tensor = jnp.pad(input_tensor, ((0, T_pad - T), (0, 0)))

    kernel = functools.partial(bert_output_kernel, eps=eps)

    cost = pl.CostEstimate(
        flops=2 * T_pad * I * H,
        transcendentals=T_pad,  # one rsqrt per token row
        bytes_accessed=(T_pad * I * act_itemsize
                        + I * H * w_itemsize
                        + T_pad * H * act_itemsize
                        + T_pad * H * out_itemsize
                        + 3 * H * 4),
    )

    out = pl.pallas_call(
        kernel,
        out_shape=jax.ShapeDtypeStruct((T_pad, H), out_dtype),
        grid_spec=pltpu.PrefetchScalarGridSpec(
            num_scalar_prefetch=0,
            grid=(T_pad // tm_eff,),
            in_specs=[
                pl.BlockSpec((tm_eff, I), lambda i: (i, 0)),  # hidden_states tile
                pl.BlockSpec((I, H), lambda i: (0, 0)),       # dense weight (resident)
                pl.BlockSpec((1, H), lambda i: (0, 0)),       # dense bias
                pl.BlockSpec((tm_eff, H), lambda i: (i, 0)),  # residual tile
                pl.BlockSpec((1, H), lambda i: (0, 0)),       # LN gamma
                pl.BlockSpec((1, H), lambda i: (0, 0)),       # LN beta
            ],
            out_specs=pl.BlockSpec((tm_eff, H), lambda i: (i, 0)),
        ),
        compiler_params=pltpu.CompilerParams(
            dimension_semantics=("parallel",),
            vmem_limit_bytes=64 * 1024 * 1024,
        ),
        cost_estimate=cost,
    )(hidden_states, weight, bias, input_tensor, gamma, beta)

    return out[:T] if T_pad != T else out


if __name__ == "__main__":
    # Small BERT-like config
    batch, seq = 2, 8
    hidden_size = 32
    intermediate_size = 128
    eps = 1e-12

    key = jax.random.PRNGKey(0)
    k1, k2, k3, k4, k5, k6 = jax.random.split(key, 6)

    # deterministic synthetic parameters (shapes per nn.Linear / nn.LayerNorm)
    weight = jax.random.normal(k1, (intermediate_size, hidden_size), jnp.float32) * 0.02
    bias = jax.random.normal(k2, (1, hidden_size), jnp.float32) * 0.02
    gamma = jnp.ones((1, hidden_size), jnp.float32) + 0.1 * jax.random.normal(
        k3, (1, hidden_size), jnp.float32)
    beta = 0.1 * jax.random.normal(k4, (1, hidden_size), jnp.float32)

    hidden_states = jax.random.normal(
        k5, (batch, seq, intermediate_size), jnp.float32)
    input_tensor = jax.random.normal(
        k6, (batch, seq, hidden_size), jnp.float32)

    # flatten (batch, seq) -> tokens for the kernel
    h2d = hidden_states.reshape(-1, intermediate_size)
    r2d = input_tensor.reshape(-1, hidden_size)

    out = bert_output(h2d, r2d, weight, bias, gamma, beta, eps=eps)
    out = out.reshape(batch, seq, hidden_size)
    jax.block_until_ready(out)

    # reference check in plain JAX
    x_ref = h2d @ weight + bias + r2d
    mu = x_ref.mean(-1, keepdims=True)
    var = ((x_ref - mu) ** 2).mean(-1, keepdims=True)
    ref = ((x_ref - mu) / jnp.sqrt(var + eps)) * gamma + beta
    ref = ref.reshape(batch, seq, hidden_size)
    assert jnp.allclose(out, ref, atol=1e-4, rtol=1e-4), "mismatch vs reference"

    print("KERNEL_OK")
</pallas_src>

<mosaic_0001>
module attributes {stable_mosaic.version = 11 : i64} {
  func.func @bert_output_kernel(%arg0: i32, %arg1: memref<16x128xf32, #tpu.memory_space<vmem>>, %arg2: memref<128x32xf32, #tpu.memory_space<vmem>>, %arg3: memref<1x32xf32, #tpu.memory_space<vmem>>, %arg4: memref<16x32xf32, #tpu.memory_space<vmem>>, %arg5: memref<1x32xf32, #tpu.memory_space<vmem>>, %arg6: memref<1x32xf32, #tpu.memory_space<vmem>>, %arg7: memref<16x32xf32, #tpu.memory_space<vmem>>) attributes {dimension_semantics = [#tpu.dimension_semantics<parallel>], iteration_bounds = array<i64: 1>, scalar_prefetch = 0 : i64, scratch_operands = 0 : i64, tpu.core_type = #tpu.core_type<tc>, window_params = [{transform_indices = @transform_0, window_bounds = array<i64: 16, 128>}, {pipeline_mode = #tpu.pipeline_mode<synchronous>, transform_indices = @transform_1, window_bounds = array<i64: 128, 32>}, {pipeline_mode = #tpu.pipeline_mode<synchronous>, transform_indices = @transform_2, window_bounds = array<i64: 1, 32>}, {transform_indices = @transform_3, window_bounds = array<i64: 16, 32>}, {pipeline_mode = #tpu.pipeline_mode<synchronous>, transform_indices = @transform_4, window_bounds = array<i64: 1, 32>}, {pipeline_mode = #tpu.pipeline_mode<synchronous>, transform_indices = @transform_5, window_bounds = array<i64: 1, 32>}, {transform_indices = @transform_6, window_bounds = array<i64: 16, 32>}]} {
    %c0 = arith.constant 0 : index
    %c0_0 = arith.constant 0 : index
    %0 = vector.load %arg1[%c0, %c0_0] : memref<16x128xf32, #tpu.memory_space<vmem>>, vector<16x128xf32>
    %c0_1 = arith.constant 0 : index
    %c0_2 = arith.constant 0 : index
    %1 = vector.load %arg2[%c0_1, %c0_2] : memref<128x32xf32, #tpu.memory_space<vmem>>, vector<128x32xf32>
    %cst = arith.constant dense<0.000000e+00> : vector<16x32xf32>
    %2 = tpu.matmul %0, %1, %cst {dimension_numbers = #tpu.dot_dimension_numbers<[1], [0], [0], [1], [0, 0, 1, 1], [], []>} : vector<16x128xf32>, vector<128x32xf32>, vector<16x32xf32> -> vector<16x32xf32>
    %c0_3 = arith.constant 0 : index
    %c0_4 = arith.constant 0 : index
    %3 = vector.load %arg3[%c0_3, %c0_4] : memref<1x32xf32, #tpu.memory_space<vmem>>, vector<1x32xf32>
    %c0_5 = arith.constant 0 : index
    %c0_6 = arith.constant 0 : index
    %4 = vector.load %arg5[%c0_5, %c0_6] : memref<1x32xf32, #tpu.memory_space<vmem>>, vector<1x32xf32>
    %c0_7 = arith.constant 0 : index
    %c0_8 = arith.constant 0 : index
    %5 = vector.load %arg6[%c0_7, %c0_8] : memref<1x32xf32, #tpu.memory_space<vmem>>, vector<1x32xf32>
    %c0_9 = arith.constant 0 : index
    %c0_10 = arith.constant 0 : index
    %6 = vector.load %arg4[%c0_9, %c0_10] : memref<16x32xf32, #tpu.memory_space<vmem>>, vector<16x32xf32>
    %7 = vector.broadcast %3 : vector<1x32xf32> to vector<16x32xf32>
    %8 = arith.addf %6, %7 : vector<16x32xf32>
    %9 = arith.addf %2, %8 : vector<16x32xf32>
    %cst_11 = arith.constant dense<0.000000e+00> : vector<16xf32>
    %10 = vector.multi_reduction <add>, %9, %cst_11 [1] : vector<16x32xf32> to vector<16xf32>
    %11 = vector.shape_cast %10 : vector<16xf32> to vector<16x1xf32>
    %cst_12 = arith.constant 3.200000e+01 : f32
    %12 = vector.broadcast %cst_12 : f32 to vector<16x1xf32>
    %13 = arith.divf %11, %12 : vector<16x1xf32>
    %14 = vector.broadcast %13 : vector<16x1xf32> to vector<16x32xf32>
    %15 = arith.subf %9, %14 : vector<16x32xf32>
    %16 = arith.mulf %15, %15 : vector<16x32xf32>
    %cst_13 = arith.constant dense<0.000000e+00> : vector<16xf32>
    %17 = vector.multi_reduction <add>, %16, %cst_13 [1] : vector<16x32xf32> to vector<16xf32>
    %18 = vector.shape_cast %17 : vector<16xf32> to vector<16x1xf32>
    %cst_14 = arith.constant 3.200000e+01 : f32
    %19 = vector.broadcast %cst_14 : f32 to vector<16x1xf32>
    %20 = arith.divf %18, %19 : vector<16x1xf32>
    %cst_15 = arith.constant 9.99999996E-13 : f32
    %21 = vector.broadcast %cst_15 : f32 to vector<16x1xf32>
    %22 = arith.addf %20, %21 : vector<16x1xf32>
    %23 = math.rsqrt %22 : vector<16x1xf32>
    %24 = vector.broadcast %23 : vector<16x1xf32> to vector<16x32xf32>
    %25 = vector.broadcast %4 : vector<1x32xf32> to vector<16x32xf32>
    %26 = arith.mulf %24, %25 : vector<16x32xf32>
    %27 = arith.mulf %15, %26 : vector<16x32xf32>
    %28 = vector.broadcast %5 : vector<1x32xf32> to vector<16x32xf32>
    %29 = arith.addf %27, %28 : vector<16x32xf32>
    %c0_16 = arith.constant 0 : index
    %c0_17 = arith.constant 0 : index
    %30 = vector.load %arg7[%c0_16, %c0_17] : memref<16x32xf32, #tpu.memory_space<vmem>>, vector<16x32xf32>
    tpu.vector_store %arg7[%c0_16, %c0_17], %29 {strides = array<i32>} : memref<16x32xf32, #tpu.memory_space<vmem>>, vector<16x32xf32>,
    return
  }
  func.func @transform_0(%arg0: i32) -> (i32, i32) {
    %c0_i32 = arith.constant 0 : i32
    %c0_i32_0 = arith.constant 0 : i32
    return %arg0, %c0_i32 : i32, i32
  }
  func.func @transform_1(%arg0: i32) -> (i32, i32) {
    %c0_i32 = arith.constant 0 : i32
    %c0_i32_0 = arith.constant 0 : i32
    %c0_i32_1 = arith.constant 0 : i32
    return %c0_i32, %c0_i32_0 : i32, i32
  }
  func.func @transform_2(%arg0: i32) -> (i32, i32) {
    %c0_i32 = arith.constant 0 : i32
    %c0_i32_0 = arith.constant 0 : i32
    %c0_i32_1 = arith.constant 0 : i32
    return %c0_i32, %c0_i32_0 : i32, i32
  }
  func.func @transform_3(%arg0: i32) -> (i32, i32) {
    %c0_i32 = arith.constant 0 : i32
    %c0_i32_0 = arith.constant 0 : i32
    return %arg0, %c0_i32 : i32, i32
  }
  func.func @transform_4(%arg0: i32) -> (i32, i32) {
    %c0_i32 = arith.constant 0 : i32
    %c0_i32_0 = arith.constant 0 : i32
    %c0_i32_1 = arith.constant 0 : i32
    return %c0_i32, %c0_i32_0 : i32, i32
  }
  func.func @transform_5(%arg0: i32) -> (i32, i32) {
    %c0_i32 = arith.constant 0 : i32
    %c0_i32_0 = arith.constant 0 : i32
    %c0_i32_1 = arith.constant 0 : i32
    return %c0_i32, %c0_i32_0 : i32, i32
  }
  func.func @transform_6(%arg0: i32) -> (i32, i32) {
    %c0_i32 = arith.constant 0 : i32
    %c0_i32_0 = arith.constant 0 : i32
    return %arg0, %c0_i32 : i32, i32
  }
}

</mosaic_0001>

<bundles_post_ra>
// kernel: tpu_custom_call.1
= control target key start
LH: loop header
LB: loop body
LE: loop exit
PB: predicated region body
PF: predicated region fallthrough
CT: control target
= control target key end

     0   :  { %11 = vsyncpa [#allocation3], 0  ;;  %s690_s0 = inlined_call_operand.hbm [shape: f32[16,128], index: 0, kind: input, shape index: {}]   ;;  %s691_s1 = inlined_call_operand.hbm [shape: f32[128,32], index: 1, kind: input, shape index: {}]   ;;  %s692_s2 = inlined_call_operand.hbm [shape: f32[1,32], index: 2, kind: input, shape index: {}]   ;;  %s693_s3 = inlined_call_operand.hbm [shape: f32[16,32], index: 3, kind: input, shape index: {}]   ;;  %s694_s4 = inlined_call_operand.hbm [shape: f32[1,32], index: 4, kind: input, shape index: {}]   ;;  %s695_s5 = inlined_call_operand.hbm [shape: f32[1,32], index: 5, kind: input, shape index: {}]   ;;  %s696_s6 = inlined_call_operand.hbm [shape: f32[16,32], index: 6, kind: output, shape index: {}]  }
   0x1   :  { %12 = vsyncpa [#allocation6], 0 }
   0x2   :  { %13 = vsyncpa [#allocation9], 0 }
   0x3   :  { %14 = vsyncpa [#allocation12], 0 }
   0x4   :  { %15 = vsyncpa [#allocation4], 0  ;;  %s537_s21 = smov [#allocation5]   ;;  %s538_s23 = smov [#allocation8]  }
   0x5   :  { %s33_s22 = sshll.u32 %s537_s21, 4  ;;  %s55_s24 = sshll.u32 %s538_s23, 4  ;;  %s34_s22 = int_to_ptr.vmem [resolvable:$true] %s33_s22  ;;  %s581_s24 = int_to_ptr.vmem [resolvable:$true] %s55_s24 }
   0x6   :  { %s373_s27 = scalar_lea.hbm %s691_s1, 2048 }
   0x7   :  { %p374_p0 = scmp.ne.s32.totalorder %s691_s1, %s373_s27  ;;  %p377_p1 = scmp.lt.u32.totalorder %s373_s27, %s691_s1 }
   0x9   :  { %p379_p2 = pnand %p377_p1, %p374_p0 }
   0xb   :  { %382 = shalt.err (!%p379_p2)
}
   0xc   :  { %s383_s8 = scalar_lea.vmem %s34_s22, 2048  ;;  %p388_p4 = scmp.lt.s32.totalorder %s34_s22, %s34_s22 }
   0xd   :  { %p384_p3 = scmp.ne.s32.totalorder %s34_s22, %s383_s8  ;;  %p389_p5 = scmp.lt.s32.totalorder %s383_s8, %s383_s8 }
   0xf   :  { %p390_p6 = por %p389_p5, %p388_p4 }
  0x11   :  { %p391_p7 = pnand %p390_p6, %p384_p3 }
  0x13   :  { %394 = shalt.err (!%p391_p7)
}
  0x14   :  { %s539_s9 = smov 128   ;;  %s540_s10 = smov 8  }
  0x15   :  { %39 = dma.hbm_to_vmem [thread:$0]  %s691_s1, 2048, %s34_s22, [#allocation6], %s539_s9, %s539_s9, %s540_s10  }
  0x16   :  { %s395_s15 = scalar_lea.hbm %s693_s3, 256 }
  0x17   :  { %p396_p8 = scmp.ne.s32.totalorder %s693_s3, %s395_s15  ;;  %p399_p9 = scmp.lt.u32.totalorder %s395_s15, %s693_s3 }
  0x19   :  { %p401_p10 = pnand %p399_p9, %p396_p8 }
  0x1b   :  { %404 = shalt.err (!%p401_p10)
}
  0x1c   :  { %s405_s20 = scalar_lea.vmem %s581_s24, 256  ;;  %p410_p12 = scmp.lt.s32.totalorder %s581_s24, %s581_s24 }
  0x1d   :  { %p406_p11 = scmp.ne.s32.totalorder %s581_s24, %s405_s20  ;;  %p411_p13 = scmp.lt.s32.totalorder %s405_s20, %s405_s20 }
  0x1f   :  { %p412_p0 = por %p411_p13, %p410_p12 }
  0x21   :  { %p413_p1 = pnand %p412_p0, %p406_p11 }
  0x23   :  { %416 = shalt.err (!%p413_p1)
}
  0x24   :  { %61 = dma.hbm_to_vmem [thread:$0]  %s693_s3, 256, %s581_s24, [#allocation9], %s539_s9, %s539_s9, %s540_s10  }
  0x25   :  { %s541_s22 = smov [#allocation2]   ;;  %s542_s25 = smov [#allocation7]  }
  0x26   :  { %s21_s23 = sshll.u32 %s541_s22, 4  ;;  %s46_s26 = sshll.u32 %s542_s25, 4  ;;  %s22_s23 = int_to_ptr.vmem [resolvable:$true] %s21_s23  ;;  %s47_s26 = int_to_ptr.vmem [resolvable:$true] %s46_s26 }
  0x27   :  { %s417_s29 = scalar_lea.hbm %s690_s0, 256 }
  0x28   :  { %p418_p2 = scmp.ne.s32.totalorder %s690_s0, %s417_s29  ;;  %p421_p3 = scmp.lt.u32.totalorder %s417_s29, %s690_s0 }
  0x2a   :  { %p423_p4 = pnand %p421_p3, %p418_p2 }
  0x2c   :  { %426 = shalt.err (!%p423_p4)
}
  0x2d   :  { %s427_s3 = scalar_lea.vmem %s22_s23, 256  ;;  %p432_p6 = scmp.lt.s32.totalorder %s22_s23, %s22_s23 }
  0x2e   :  { %p428_p5 = scmp.ne.s32.totalorder %s22_s23, %s427_s3  ;;  %p433_p7 = scmp.lt.s32.totalorder %s427_s3, %s427_s3 }
  0x30   :  { %p434_p8 = por %p433_p7, %p432_p6 }
  0x32   :  { %p435_p9 = pnand %p434_p8, %p428_p5 }
  0x34   :  { %438 = shalt.err (!%p435_p9)
}
  0x35   :  { %27 = dma.hbm_to_vmem [thread:$0]  %s690_s0, 256, %s22_s23, [#allocation3], %s539_s9, %s539_s9, %s540_s10  }
  0x36   :  { %s439_s15 = scalar_lea.hbm %s692_s2, 16 }
  0x37   :  { %p440_p10 = scmp.ne.s32.totalorder %s692_s2, %s439_s15  ;;  %p443_p11 = scmp.lt.u32.totalorder %s439_s15, %s692_s2 }
  0x39   :  { %p445_p12 = pnand %p443_p11, %p440_p10 }
  0x3b   :  { %448 = shalt.err (!%p445_p12)
}
  0x3c   :  { %s449_s20 = scalar_lea.vmem %s47_s26, 16  ;;  %s453_s1 = scalar_lea.vmem %s47_s26, 32 }
  0x3d   :  { %p450_p13 = scmp.ne.s32.totalorder %s47_s26, %s449_s20  ;;  %p454_p0 = scmp.lt.s32.totalorder %s47_s26, %s47_s26 }
  0x3e   :  { %p455_p1 = scmp.lt.s32.totalorder %s453_s1, %s449_s20 }
  0x40   :  { %p456_p2 = por %p455_p1, %p454_p0 }
  0x42   :  { %p457_p3 = pnand %p456_p2, %p450_p13 }
  0x44   :  { %460 = shalt.err (!%p457_p3)
}
  0x45   :  { %49 = dma.hbm_to_vmem [thread:$0]  %s692_s2, 16, %s47_s26, [#allocation6]  }
  0x46   :  { %s543_s22 = smov [#allocation10]   ;;  %s544_s25 = smov [#allocation11]  }
  0x47   :  { %s68_s23 = sshll.u32 %s543_s22, 4  ;;  %s78_s27 = sshll.u32 %s544_s25, 4  ;;  %s69_s23 = int_to_ptr.vmem [resolvable:$true] %s68_s23  ;;  %s79_s27 = int_to_ptr.vmem [resolvable:$true] %s78_s27 }
  0x48   :  { %s461_s30 = scalar_lea.hbm %s694_s4, 16 }
  0x49   :  { %p462_p4 = scmp.ne.s32.totalorder %s694_s4, %s461_s30  ;;  %p465_p5 = scmp.lt.u32.totalorder %s461_s30, %s694_s4 }
  0x4b   :  { %p467_p6 = pnand %p465_p5, %p462_p4 }
  0x4d   :  { %470 = shalt.err (!%p467_p6)
}
  0x4e   :  { %s471_s2 = scalar_lea.vmem %s69_s23, 16  ;;  %s475_s26 = scalar_lea.vmem %s69_s23, 32 }
  0x4f   :  { %p472_p7 = scmp.ne.s32.totalorder %s69_s23, %s471_s2  ;;  %p476_p8 = scmp.lt.s32.totalorder %s69_s23, %s69_s23 }
  0x50   :  { %p477_p9 = scmp.lt.s32.totalorder %s475_s26, %s471_s2 }
  0x52   :  { %p478_p10 = por %p477_p9, %p476_p8 }
  0x54   :  { %p479_p11 = pnand %p478_p10, %p472_p7 }
  0x56   :  { %482 = shalt.err (!%p479_p11)
}
  0x57   :  { %71 = dma.hbm_to_vmem [thread:$0]  %s694_s4, 16, %s69_s23, [#allocation9]  }
  0x58   :  { %s483_s15 = scalar_lea.hbm %s695_s5, 16 }
  0x59   :  { %p484_p12 = scmp.ne.s32.totalorder %s695_s5, %s483_s15  ;;  %p487_p13 = scmp.lt.u32.totalorder %s483_s15, %s695_s5 }
  0x5b   :  { %p489_p0 = pnand %p487_p13, %p484_p12 }
  0x5d   :  { %492 = shalt.err (!%p489_p0)
}
  0x5e   :  { %s493_s20 = scalar_lea.vmem %s79_s27, 16  ;;  %s497_s1 = scalar_lea.vmem %s79_s27, 32 }
  0x5f   :  { %p494_p1 = scmp.ne.s32.totalorder %s79_s27, %s493_s20  ;;  %p498_p2 = scmp.lt.s32.totalorder %s79_s27, %s79_s27 }
  0x60   :  { %p499_p3 = scmp.lt.s32.totalorder %s497_s1, %s493_s20 }
  0x62   :  { %p500_p4 = por %p499_p3, %p498_p2 }
  0x64   :  { %p501_p5 = pnand %p500_p4, %p494_p1 }
  0x66   :  { %504 = shalt.err (!%p501_p5)
}
  0x67   :  { %81 = dma.hbm_to_vmem [thread:$0]  %s695_s5, 16, %s79_s27, [#allocation12]  }
  0x68   :  { %527 = dma.done.wait [#allocation3], 256  }
  0x69   :  { %528 = vsyncadd [#allocation3], 4294967040 }
  0x6a   :  { %529 = dma.done.wait [#allocation6], 2064  }
  0x6b   :  { %530 = vsyncadd [#allocation6], 4294965232 }
  0x6c   :  { %531 = dma.done.wait [#allocation9], 272  }
  0x6d   :  { %532 = vsyncadd [#allocation9], 4294967024 }
  0x6e   :  { %533 = dma.done.wait [#allocation12], 16  }
  0x6f   :  { %534 = vsyncadd [#allocation12], 4294967280  ;;  %v102_v0 = vld [vmem:[#allocation5] sm:$0xff]  ;;  %v103_v1 = vld [vmem:[#allocation5 + $0x8] sm:$0xff]  ;;  %vm206_vm0 = vcmask 261120   ;;  %s545_s5 = smov [#allocation13]  }
  0x70   :  { %v104_v2 = vld [vmem:[#allocation5 + $0x10] sm:$0xff]  ;;  %v328_v3 = vpack.c.bf16 %v103_v1, %v102_v0  ;;  %v105_v4 = vld [vmem:[#allocation5 + $0x18] sm:$0xff]  ;;  %v106_v6 = vld [vmem:[#allocation5 + $0x20] sm:$0xff]  ;;  %s257_s21 = sshll.u32 %s545_s5, 4  ;;  %s258_s21 = int_to_ptr.vmem [resolvable:$true] %s257_s21 }
  0x71   :  { %v332_v5 = vpack.c.bf16 %v105_v4, %v104_v2  ;;  %v107_v7 = vld [vmem:[#allocation5 + $0x28] sm:$0xff]  ;;  %v100_v9 = vld [vmem:[#allocation2] sm:$0xff]  ;;  %v109_v11 = vld [vmem:[#allocation5 + $0x38] sm:$0xff]  ;;  %s505_s22 = scalar_lea.vmem %s258_s21, 256  ;;  %p510_p7 = scmp.lt.s32.totalorder %s258_s21, %s258_s21 }
  0x72   :  { %329 = vmatprep.subr.bf16.mxu0 %v328_v3  ;;  %v336_v8 = vpack.c.bf16 %v107_v7, %v106_v6  ;;  %v108_v10 = vld [vmem:[#allocation5 + $0x30] sm:$0xff]  ;;  %325 = vmatprep.mubr.f32.mxu0 %v100_v9  ;;  %v110_v13 = vld [vmem:[#allocation5 + $0x40] sm:$0xff]  ;;  %v111_v14 = vld [vmem:[#allocation5 + $0x48] sm:$0xff]  ;;  %p506_p6 = scmp.ne.s32.totalorder %s258_s21, %s505_s22  ;;  %p511_p8 = scmp.lt.s32.totalorder %s505_s22, %s505_s22 }
  0x73   :  { %331 = vmatpush3.bf16.msra.mxu0 %v328_v3  ;;  %v340_v12 = vpack.c.bf16 %v109_v11, %v108_v10  ;;  %v344_v15 = vpack.c.bf16 %v111_v14, %v110_v13  ;;  %v112_v16 = vld [vmem:[#allocation5 + $0x50] sm:$0xff]  ;;  %v113_v17 = vld [vmem:[#allocation5 + $0x58] sm:$0xff]  ;;  %v114_v19 = vld [vmem:[#allocation5 + $0x60] sm:$0xff] }
  0x74   :  { %333 = vmatprep.subr.bf16.mxu0 %v332_v5  ;;  %v348_v18 = vpack.c.bf16 %v113_v17, %v112_v16  ;;  %v115_v20 = vld [vmem:[#allocation5 + $0x68] sm:$0xff]  ;;  %v116_v22 = vld [vmem:[#allocation5 + $0x70] sm:$0xff]  ;;  %v117_v23 = vld [vmem:[#allocation5 + $0x78] sm:$0xff]  ;;  %p512_p9 = por %p511_p8, %p510_p7 }
  0x75   :  { %v352_v21 = vpack.c.bf16 %v115_v20, %v114_v19  ;;  %v356_v24 = vpack.c.bf16 %v117_v23, %v116_v22  ;;  %v101_v25 = vld [vmem:[#allocation2 + $0x8] sm:$0xff]  ;;  %v272_v26 = vld [vmem:[#allocation7] ss:$0 sm:$0xff]  ;;  %v121_v27 = vld [vmem:[#allocation8] sm:$0xff] }
  0x76   :  { %v122_v28 = vld [vmem:[#allocation8 + $0x8] sm:$0xff]  ;;  %v129_v29 = vadd.f32 %v272_v26, %v121_v27  ;;  %v273_v53 = vld [vmem:[#allocation10] ss:$0 sm:$0xff]  ;;  %v274_v56 = vld [vmem:[#allocation11] ss:$0 sm:$0xff]  ;;  %p513_p10 = pnand %p512_p9, %p506_p6 }
  0x77   :  { %335 = vmatpush3.bf16.msra.mxu0 %v332_v5  ;;  %v130_v30 = vadd.f32 %v272_v26, %v122_v28 }
  0x78   :  { %337 = vmatprep.subr.bf16.mxu0 %v336_v8 }
  0x7b   :  { %339 = vmatpush3.bf16.msra.mxu0 %v336_v8 }
  0x7c   :  { %341 = vmatprep.subr.bf16.mxu0 %v340_v12 }
  0x7f   :  { %343 = vmatpush3.bf16.msra.mxu0 %v340_v12 }
  0x80   :  { %345 = vmatprep.subr.bf16.mxu0 %v344_v15 }
  0x83   :  { %347 = vmatpush3.bf16.msra.mxu0 %v344_v15 }
  0x84   :  { %349 = vmatprep.subr.bf16.mxu0 %v348_v18 }
  0x87   :  { %351 = vmatpush3.bf16.msra.mxu0 %v348_v18 }
  0x88   :  { %353 = vmatprep.subr.bf16.mxu0 %v352_v21 }
  0x8b   :  { %355 = vmatpush3.bf16.msra.mxu0 %v352_v21 }
  0x8c   :  { %357 = vmatprep.subr.bf16.mxu0 %v356_v24 }
  0x8f   :  { %359 = vmatpush3.bf16.msra.mxu0 %v356_v24 }
  0x92   :  { %326 = vmatmul.mubr.f32.vlgmr.msra.gmra.mrb[0].mxu0 %v101_v25 }
 0x165   :  { %v327_v31 = vpop.f32.mrb[0].mxu0 }
 0x166   :  { %v197_v32 = vpop.f32.mrb[1].mxu0  ;;  %v203_v34 = vadd.f32 %v327_v31, %v130_v30 }
 0x167   :  { %v198_v33 = vadd.f32 %v197_v32, %v129_v29 }
 0x168   :  { %v210_v36 = vsel %vm206_vm0, %v203_v34, 0.0 }
 0x169   :  { %v207_v35 = vsel %vm206_vm0, %v198_v33, 0.0 }
 0x16a   :  { %208 = vadd.xlane.f32.xlu0 %v207_v35 }
 0x16e   :  { %211 = vadd.xlane.f32.xlu0 %v210_v36 }
 0x1f7   :  { %v209_v37 = vpop.xlane.xlu0 %208 }
 0x1f8   :  { %v214_v38 = vmul.f32 0.03125, %v209_v37 }
 0x1fa   :  { %v216_v39 = vsub.f32 %v198_v33, %v214_v38 }
 0x1fb   :  { %v212_v40 = vpop.xlane.xlu0 %211 }
 0x1fc   :  { %v215_v41 = vmul.f32 0.03125, %v212_v40  ;;  %v218_v42 = vmul.f32 %v216_v39, %v216_v39 }
 0x1fe   :  { %v217_v43 = vsub.f32 %v203_v34, %v215_v41  ;;  %v220_v44 = vsel %vm206_vm0, %v218_v42, 0.0 }
 0x1ff   :  { %221 = vadd.xlane.f32.xlu1 %v220_v44 }
 0x200   :  { %v219_v45 = vmul.f32 %v217_v43, %v217_v43 }
 0x202   :  { %v223_v46 = vsel %vm206_vm0, %v219_v45, 0.0 }
 0x203   :  { %224 = vadd.xlane.f32.xlu1 %v223_v46 }
 0x28c   :  { %v222_v47 = vpop.xlane.xlu1 %221 }
 0x28d   :  { %v226_v48 = vmul.f32 0.03125, %v222_v47 }
 0x28f   :  { %v228_v49 = vadd.f32 1e-12, %v226_v48 }
 0x290   :  { %v225_v50 = vpop.xlane.xlu1 %224 }
 0x291   :  { %369 = vrsqrt.f32 %v228_v49  ;;  %v227_v51 = vmul.f32 0.03125, %v225_v50 }
 0x293   :  { %v229_v52 = vadd.f32 1e-12, %v227_v51 }
 0x295   :  { %371 = vrsqrt.f32 %v229_v52 }
 0x29b   :  { %v370_v54 = vpop.eup %369 }
 0x29c   :  { %v238_v55 = vmul.f32 %v370_v54, %v273_v53 }
 0x29e   :  { %v240_v57 = vmul.f32 %v238_v55, %v216_v39 }
 0x29f   :  { %v372_v58 = vpop.eup %371 }
 0x2a0   :  { %v239_v59 = vmul.f32 %v372_v58, %v273_v53  ;;  %v248_v60 = vadd.f32 %v274_v56, %v240_v57 }
 0x2a2   :  { %v241_v61 = vmul.f32 %v239_v59, %v217_v43  ;;  %250 = vst.msk [vmem:[#allocation13] sm:$0xff] %vm206_vm0, %v248_v60 }
 0x2a4   :  { %v249_v62 = vadd.f32 %v274_v56, %v241_v61 }
 0x2a6   :  { %251 = vst.msk [vmem:[#allocation13 + $0x8] sm:$0xff] %vm206_vm0, %v249_v62 }
 0x2a7   :  { %516 = shalt.err (!%p513_p10)
}
 0x2a8   :  { %s517_s27 = scalar_lea.hbm %s696_s6, 256 }
 0x2a9   :  { %p518_p11 = scmp.ne.s32.totalorder %s696_s6, %s517_s27  ;;  %p521_p12 = scmp.lt.u32.totalorder %s517_s27, %s696_s6 }
 0x2ab   :  { %p523_p13 = pnand %p521_p12, %p518_p11 }
 0x2ad   :  { %526 = shalt.err (!%p523_p13)
}
 0x2ae   :  { %263 = dma.vmem_to_hbm [thread:$0]  %s258_s21, 256, %s696_s6, [#allocation4], %s539_s9, %s539_s9, %s540_s10  }
 0x2af   :  { %535 = dma.done.wait [#allocation4], 256  }
 0x2b0   :  { %536 = vsyncadd [#allocation4], 4294967040 }
 0x2b1   :  { %267 = vsyncpa [#allocation3], 1 }
 0x2b2   :  { %268 = vsyncpa [#allocation6], 1 }
 0x2b3   :  { %269 = vsyncpa [#allocation9], 1 }
 0x2b4   :  { %270 = vsyncpa [#allocation12], 1 }
 0x2b5   :  { %271 = vsyncpa [#allocation4], 1 }

</bundles_post_ra>
